<compile_context>
chip_gen: v7x
topology: tpu7x:2x2x1
jax: 0.10.0
libtpu: 0.0.40
codegen_flags: <defaults>
</compile_context>

<pallas_src>
import math

import jax
import jax.numpy as jnp
from jax.experimental import pallas as pl
from jax.experimental.pallas import tpu as pltpu

# Problem sizes (small, consistent with the module: d_model divisible by h).
B = 2            # batch
S = 8            # sequence length
D = 32           # d_model
H = 4            # number of heads
D_K = D // H     # per-head dim
HB = H * B       # combined (head, batch) leading axis, index = h*B + b

NEG_INF = -1000000000.0  # exact constant used by masked_fill_ in the reference


def _mha_kernel(q_ref, k_ref, v_ref, mask_ref,
                w_in_ref, b_in_ref, wo_ref, bo_ref, out_ref):
    bf16 = jnp.bfloat16

    # --- Lane-dense fused projections: [B*S, D] @ [D, D], bf16 in / f32 acc.
    # The 1/sqrt(d_k) attention scale is already folded into w_in[0] / b_in[0].
    q2 = jnp.dot(q_ref[...].astype(bf16), w_in_ref[0],
                 preferred_element_type=jnp.float32) + b_in_ref[0]
    k2 = jnp.dot(k_ref[...].astype(bf16), w_in_ref[1],
                 preferred_element_type=jnp.float32) + b_in_ref[1]
    v2 = jnp.dot(v_ref[...].astype(bf16), w_in_ref[2],
                 preferred_element_type=jnp.float32) + b_in_ref[2]

    def split_heads(x2):
        # [B*S, D] -> [H*B, S, D_K]   (leading index n = h*B + b)
        x3 = x2.reshape(B, S, D)
        return jnp.concatenate(
            [x3[:, :, h * D_K:(h + 1) * D_K] for h in range(H)], axis=0)

    qh = split_heads(q2).astype(bf16)     # pre-scaled (scale folded into Wq/bq)
    kh = split_heads(k2).astype(bf16)
    vh = split_heads(v2).astype(bf16)

    # --- Attention core, (head, batch)-batched on a single leading axis.
    scores = jnp.einsum('nqd,nkd->nqk', qh, kh,
                        preferred_element_type=jnp.float32)       # [HB, S, S]

    # masked_fill_(mask == 0, -1e9); mask broadcast over heads in-kernel.
    mask_hb = jnp.broadcast_to(mask_ref[...], (H, B, S, S)).reshape(HB, S, S)
    scores = jnp.where(mask_hb == 0.0, NEG_INF, scores)

    # Softmax over the key axis; normalisation via EUP approximate reciprocal.
    m = jnp.max(scores, axis=-1, keepdims=True)
    e = jnp.exp(scores - m)
    p_attn = e * pl.reciprocal(jnp.sum(e, axis=-1, keepdims=True), approx=True)

    # TODO(synk): dropout on p_attn omitted (identity / eval mode).

    ctx = jnp.einsum('nqk,nkd->nqd', p_attn.astype(bf16), vh,
                     preferred_element_type=jnp.float32)          # [HB, S, D_K]

    # --- Merge heads back onto lanes and run ONE lane-dense output projection.
    merged = jnp.concatenate(
        [ctx[h * B:(h + 1) * B] for h in range(H)], axis=-1)      # [B, S, D]
    merged2 = merged.reshape(B * S, D).astype(bf16)
    out_ref[...] = jnp.dot(merged2, wo_ref[...],
                           preferred_element_type=jnp.float32) + bo_ref[...]


def pack_params(params):
    """Parameter-only packing; run ONCE, outside the per-call jitted path."""
    wq, bq, wk, bk, wv, bv, wo, bo = params
    scale = 1.0 / math.sqrt(D_K)
    # Fold the attention scale into the query projection (algebraically exact).
    w_in = jnp.stack([wq * scale, wk, wv]).astype(jnp.bfloat16)   # [3, D, D]
    b_in = jnp.stack([bq * scale, bk, bv]).astype(jnp.float32)    # [3, 1, D]
    return w_in, b_in, wo.astype(jnp.bfloat16), bo.astype(jnp.float32)


@jax.jit
def multi_head_attention(query, key, value, mask, w_in, b_in, wo, bo):
    """query/key/value: [B, S, D]; mask: [B, S, S] (1 keep, 0 mask)."""
    # Contiguous [B*S, D] views — free bitcast, gives lane-dense matmul LHS.
    q2 = query.reshape(B * S, D)
    k2 = key.reshape(B * S, D)
    v2 = value.reshape(B * S, D)
    mask_f = mask.astype(jnp.float32)   # robust to bool/int masks

    vmem = lambda: pl.BlockSpec(memory_space=pltpu.MemorySpace.VMEM)
    out2 = pl.pallas_call(
        _mha_kernel,
        out_shape=jax.ShapeDtypeStruct((B * S, D), jnp.float32),
        in_specs=[vmem() for _ in range(8)],
        out_specs=vmem(),
    )(q2, k2, v2, mask_f, w_in, b_in, wo, bo)
    return out2.reshape(B, S, D)


def _reference(query, key, value, mask, params):
    """Plain-JAX (f32) reimplementation of the PyTorch forward (eval mode)."""
    wq, bq, wk, bk, wv, bv, wo, bo = params

    def proj(x, w, b):
        return x @ w + b  # w stored as [in, out]

    def split_heads(x):  # [B, S, D] -> [B, H, S, d_k]
        return x.reshape(B, S, H, D_K).transpose(0, 2, 1, 3)

    q = split_heads(proj(query, wq, bq))
    k = split_heads(proj(key, wk, bk))
    v = split_heads(proj(value, wv, bv))

    scores = jnp.einsum('bhqd,bhkd->bhqk', q, k) / math.sqrt(D_K)
    scores = jnp.where(mask[:, None, :, :] == 0.0, NEG_INF, scores)
    p = jax.nn.softmax(scores, axis=-1)
    x = jnp.einsum('bhqk,bhkd->bhqd', p, v)
    x = x.transpose(0, 2, 1, 3).reshape(B, S, D)
    return x @ wo + bo


def _init_params(key):
    ks = jax.random.split(key, 8)
    lim = 1.0 / math.sqrt(D)

    def w(k):  # stored as [in, out] (transposed nn.Linear weight)
        return jax.random.uniform(k, (D, D), jnp.float32, -lim, lim)

    def bias(k):
        return jax.random.uniform(k, (1, D), jnp.float32, -lim, lim)

    return (w(ks[0]), bias(ks[1]),   # Wq, bq
            w(ks[2]), bias(ks[3]),   # Wk, bk
            w(ks[4]), bias(ks[5]),   # Wv, bv
            w(ks[6]), bias(ks[7]))   # Wo, bo


if __name__ == "__main__":
    root = jax.random.PRNGKey(0)
    k_q, k_k, k_v, k_p = jax.random.split(root, 4)

    query = jax.random.normal(k_q, (B, S, D), jnp.float32)
    key_in = jax.random.normal(k_k, (B, S, D), jnp.float32)
    value = jax.random.normal(k_v, (B, S, D), jnp.float32)

    # Causal-style mask (1 = attend) to exercise the masked_fill_ path.
    mask = jnp.tril(jnp.ones((S, S), jnp.float32))[None, :, :].repeat(B, axis=0)

    params = _init_params(k_p)
    packed = pack_params(params)   # one-time packing, outside the jitted call

    out = multi_head_attention(query, key_in, value, mask, *packed)
    out = jax.block_until_ready(out)

    ref = _reference(query, key_in, value, mask, params)
    assert out.shape == (B, S, D)
    # Tolerance 3e-2: bf16 MXU operands (f32 accumulation) + approximate
    # reciprocal softmax normalisation vs. a pure-f32 reference.
    assert jnp.allclose(out, ref, atol=3e-2, rtol=3e-2), \
        f"max abs err {float(jnp.max(jnp.abs(out - ref)))}"

    print("KERNEL_OK")
</pallas_src>

<mosaic_0001>
module attributes {stable_mosaic.version = 11 : i64} {
  func.func @_mha_kernel(%arg0: memref<16x32xf32, #tpu.memory_space<vmem>>, %arg1: memref<16x32xf32, #tpu.memory_space<vmem>>, %arg2: memref<16x32xf32, #tpu.memory_space<vmem>>, %arg3: memref<2x8x8xf32, #tpu.memory_space<vmem>>, %arg4: memref<3x32x32xbf16, #tpu.memory_space<vmem>>, %arg5: memref<3x1x32xf32, #tpu.memory_space<vmem>>, %arg6: memref<32x32xbf16, #tpu.memory_space<vmem>>, %arg7: memref<1x32xf32, #tpu.memory_space<vmem>>, %arg8: memref<16x32xf32, #tpu.memory_space<vmem>>) attributes {dimension_semantics = [], scalar_prefetch = 0 : i64, scratch_operands = 0 : i64, tpu.core_type = #tpu.core_type<tc>} {
    %c0 = arith.constant 0 : index
    %c0_0 = arith.constant 0 : index
    %0 = vector.load %arg0[%c0, %c0_0] : memref<16x32xf32, #tpu.memory_space<vmem>>, vector<16x32xf32>
    %1 = arith.truncf %0 : vector<16x32xf32> to vector<16x32xbf16>
    %c0_1 = arith.constant 0 : index
    %c0_2 = arith.constant 0 : index
    %c0_3 = arith.constant 0 : index
    %2 = vector.load %arg4[%c0_1, %c0_2, %c0_3] : memref<3x32x32xbf16, #tpu.memory_space<vmem>>, vector<1x32x32xbf16>
    %3 = vector.shape_cast %2 : vector<1x32x32xbf16> to vector<32x32xbf16>
    %cst = arith.constant dense<0.000000e+00> : vector<16x32xf32>
    %4 = tpu.matmul %1, %3, %cst {dimension_numbers = #tpu.dot_dimension_numbers<[1], [0], [0], [1], [0, 0, 1, 1], [], []>} : vector<16x32xbf16>, vector<32x32xbf16>, vector<16x32xf32> -> vector<16x32xf32>
    %c0_4 = arith.constant 0 : index
    %c0_5 = arith.constant 0 : index
    %c0_6 = arith.constant 0 : index
    %5 = vector.load %arg5[%c0_4, %c0_5, %c0_6] : memref<3x1x32xf32, #tpu.memory_space<vmem>>, vector<1x1x32xf32>
    %6 = vector.shape_cast %5 : vector<1x1x32xf32> to vector<1x32xf32>
    %7 = vector.broadcast %6 : vector<1x32xf32> to vector<16x32xf32>
    %8 = arith.addf %4, %7 : vector<16x32xf32>
    %c0_7 = arith.constant 0 : index
    %c0_8 = arith.constant 0 : index
    %9 = vector.load %arg1[%c0_7, %c0_8] : memref<16x32xf32, #tpu.memory_space<vmem>>, vector<16x32xf32>
    %10 = arith.truncf %9 : vector<16x32xf32> to vector<16x32xbf16>
    %c1 = arith.constant 1 : index
    %c0_9 = arith.constant 0 : index
    %c0_10 = arith.constant 0 : index
    %11 = vector.load %arg4[%c1, %c0_9, %c0_10] : memref<3x32x32xbf16, #tpu.memory_space<vmem>>, vector<1x32x32xbf16>
    %12 = vector.shape_cast %11 : vector<1x32x32xbf16> to vector<32x32xbf16>
    %cst_11 = arith.constant dense<0.000000e+00> : vector<16x32xf32>
    %13 = tpu.matmul %10, %12, %cst_11 {dimension_numbers = #tpu.dot_dimension_numbers<[1], [0], [0], [1], [0, 0, 1, 1], [], []>} : vector<16x32xbf16>, vector<32x32xbf16>, vector<16x32xf32> -> vector<16x32xf32>
    %c1_12 = arith.constant 1 : index
    %c0_13 = arith.constant 0 : index
    %c0_14 = arith.constant 0 : index
    %14 = vector.load %arg5[%c1_12, %c0_13, %c0_14] : memref<3x1x32xf32, #tpu.memory_space<vmem>>, vector<1x1x32xf32>
    %15 = vector.shape_cast %14 : vector<1x1x32xf32> to vector<1x32xf32>
    %16 = vector.broadcast %15 : vector<1x32xf32> to vector<16x32xf32>
    %17 = arith.addf %13, %16 : vector<16x32xf32>
    %c0_15 = arith.constant 0 : index
    %c0_16 = arith.constant 0 : index
    %18 = vector.load %arg2[%c0_15, %c0_16] : memref<16x32xf32, #tpu.memory_space<vmem>>, vector<16x32xf32>
    %19 = arith.truncf %18 : vector<16x32xf32> to vector<16x32xbf16>
    %c2 = arith.constant 2 : index
    %c0_17 = arith.constant 0 : index
    %c0_18 = arith.constant 0 : index
    %20 = vector.load %arg4[%c2, %c0_17, %c0_18] : memref<3x32x32xbf16, #tpu.memory_space<vmem>>, vector<1x32x32xbf16>
    %21 = vector.shape_cast %20 : vector<1x32x32xbf16> to vector<32x32xbf16>
    %cst_19 = arith.constant dense<0.000000e+00> : vector<16x32xf32>
    %22 = tpu.matmul %19, %21, %cst_19 {dimension_numbers = #tpu.dot_dimension_numbers<[1], [0], [0], [1], [0, 0, 1, 1], [], []>} : vector<16x32xbf16>, vector<32x32xbf16>, vector<16x32xf32> -> vector<16x32xf32>
    %c2_20 = arith.constant 2 : index
    %c0_21 = arith.constant 0 : index
    %c0_22 = arith.constant 0 : index
    %23 = vector.load %arg5[%c2_20, %c0_21, %c0_22] : memref<3x1x32xf32, #tpu.memory_space<vmem>>, vector<1x1x32xf32>
    %24 = vector.shape_cast %23 : vector<1x1x32xf32> to vector<1x32xf32>
    %25 = vector.broadcast %24 : vector<1x32xf32> to vector<16x32xf32>
    %26 = arith.addf %22, %25 : vector<16x32xf32>
    %27 = vector.shape_cast %8 : vector<16x32xf32> to vector<2x8x32xf32>
    %28 = vector.extract_strided_slice %27 {offsets = [0, 0, 0], sizes = [2, 8, 8], strides = [1, 1, 1]} : vector<2x8x32xf32> to vector<2x8x8xf32>
    %29 = vector.extract_strided_slice %27 {offsets = [0, 0, 8], sizes = [2, 8, 8], strides = [1, 1, 1]} : vector<2x8x32xf32> to vector<2x8x8xf32>
    %30 = vector.extract_strided_slice %27 {offsets = [0, 0, 16], sizes = [2, 8, 8], strides = [1, 1, 1]} : vector<2x8x32xf32> to vector<2x8x8xf32>
    %31 = vector.extract_strided_slice %27 {offsets = [0, 0, 24], sizes = [2, 8, 8], strides = [1, 1, 1]} : vector<2x8x32xf32> to vector<2x8x8xf32>
    %32 = tpu.concatenate %28, %29, %30, %31 in 0 : vector<2x8x8xf32>, vector<2x8x8xf32>, vector<2x8x8xf32>, vector<2x8x8xf32> -> vector<8x8x8xf32>
    %33 = arith.truncf %32 : vector<8x8x8xf32> to vector<8x8x8xbf16>
    %34 = vector.shape_cast %17 : vector<16x32xf32> to vector<2x8x32xf32>
    %35 = vector.extract_strided_slice %34 {offsets = [0, 0, 0], sizes = [2, 8, 8], strides = [1, 1, 1]} : vector<2x8x32xf32> to vector<2x8x8xf32>
    %36 = vector.extract_strided_slice %34 {offsets = [0, 0, 8], sizes = [2, 8, 8], strides = [1, 1, 1]} : vector<2x8x32xf32> to vector<2x8x8xf32>
    %37 = vector.extract_strided_slice %34 {offsets = [0, 0, 16], sizes = [2, 8, 8], strides = [1, 1, 1]} : vector<2x8x32xf32> to vector<2x8x8xf32>
    %38 = vector.extract_strided_slice %34 {offsets = [0, 0, 24], sizes = [2, 8, 8], strides = [1, 1, 1]} : vector<2x8x32xf32> to vector<2x8x8xf32>
    %39 = tpu.concatenate %35, %36, %37, %38 in 0 : vector<2x8x8xf32>, vector<2x8x8xf32>, vector<2x8x8xf32>, vector<2x8x8xf32> -> vector<8x8x8xf32>
    %40 = arith.truncf %39 : vector<8x8x8xf32> to vector<8x8x8xbf16>
    %41 = vector.shape_cast %26 : vector<16x32xf32> to vector<2x8x32xf32>
    %42 = vector.extract_strided_slice %41 {offsets = [0, 0, 0], sizes = [2, 8, 8], strides = [1, 1, 1]} : vector<2x8x32xf32> to vector<2x8x8xf32>
    %43 = vector.extract_strided_slice %41 {offsets = [0, 0, 8], sizes = [2, 8, 8], strides = [1, 1, 1]} : vector<2x8x32xf32> to vector<2x8x8xf32>
    %44 = vector.extract_strided_slice %41 {offsets = [0, 0, 16], sizes = [2, 8, 8], strides = [1, 1, 1]} : vector<2x8x32xf32> to vector<2x8x8xf32>
    %45 = vector.extract_strided_slice %41 {offsets = [0, 0, 24], sizes = [2, 8, 8], strides = [1, 1, 1]} : vector<2x8x32xf32> to vector<2x8x8xf32>
    %46 = tpu.concatenate %42, %43, %44, %45 in 0 : vector<2x8x8xf32>, vector<2x8x8xf32>, vector<2x8x8xf32>, vector<2x8x8xf32> -> vector<8x8x8xf32>
    %47 = arith.truncf %46 : vector<8x8x8xf32> to vector<8x8x8xbf16>
    "tpu.trace_start"() <{level = 10 : i32, message = "nqd,nkd->nqk"}> : () -> ()
    %cst_23 = arith.constant dense<0.000000e+00> : vector<8x8x8xf32>
    %48 = tpu.matmul %33, %40, %cst_23 {dimension_numbers = #tpu.dot_dimension_numbers<[2], [2], [1], [1], [0, 0, 0, 1, 1, 1], [0], [0]>} : vector<8x8x8xbf16>, vector<8x8x8xbf16>, vector<8x8x8xf32> -> vector<8x8x8xf32>
    "tpu.trace_stop"() : () -> ()
    %c0_24 = arith.constant 0 : index
    %c0_25 = arith.constant 0 : index
    %c0_26 = arith.constant 0 : index
    %49 = vector.load %arg3[%c0_24, %c0_25, %c0_26] : memref<2x8x8xf32, #tpu.memory_space<vmem>>, vector<2x8x8xf32>
    %50 = vector.shape_cast %49 : vector<2x8x8xf32> to vector<1x2x8x8xf32>
    %51 = vector.broadcast %50 : vector<1x2x8x8xf32> to vector<4x2x8x8xf32>
    %52 = vector.shape_cast %51 : vector<4x2x8x8xf32> to vector<8x8x8xf32>
    %cst_27 = arith.constant 0.000000e+00 : f32
    %53 = vector.broadcast %cst_27 : f32 to vector<8x8x8xf32>
    %54 = arith.cmpf oeq, %52, %53 : vector<8x8x8xf32>
    %cst_28 = arith.constant -1.000000e+09 : f32
    %55 = vector.broadcast %cst_28 : f32 to vector<8x8x8xf32>
    %56 = arith.select %54, %55, %48 : vector<8x8x8xi1>, vector<8x8x8xf32>
    %cst_29 = arith.constant dense<0xFF800000> : vector<8x8xf32>
    %57 = vector.multi_reduction <maximumf>, %56, %cst_29 [2] : vector<8x8x8xf32> to vector<8x8xf32>
    %58 = vector.shape_cast %57 : vector<8x8xf32> to vector<8x8x1xf32>
    %59 = vector.broadcast %58 : vector<8x8x1xf32> to vector<8x8x8xf32>
    %60 = arith.subf %56, %59 : vector<8x8x8xf32>
    %61 = math.exp %60 : vector<8x8x8xf32>
    %cst_30 = arith.constant dense<0.000000e+00> : vector<8x8xf32>
    %62 = vector.multi_reduction <add>, %61, %cst_30 [2] : vector<8x8x8xf32> to vector<8x8xf32>
    %63 = vector.shape_cast %62 : vector<8x8xf32> to vector<8x8x1xf32>
    %64 = tpu.reciprocal %63 {approx = true} : vector<8x8x1xf32> -> vector<8x8x1xf32>
    %65 = vector.broadcast %64 : vector<8x8x1xf32> to vector<8x8x8xf32>
    %66 = arith.mulf %61, %65 : vector<8x8x8xf32>
    %67 = arith.truncf %66 : vector<8x8x8xf32> to vector<8x8x8xbf16>
    "tpu.trace_start"() <{level = 10 : i32, message = "nqk,nkd->nqd"}> : () -> ()
    %cst_31 = arith.constant dense<0.000000e+00> : vector<8x8x8xf32>
    %68 = tpu.matmul %67, %47, %cst_31 {dimension_numbers = #tpu.dot_dimension_numbers<[2], [1], [1], [2], [0, 0, 0, 1, 1, 2], [0], [0]>} : vector<8x8x8xbf16>, vector<8x8x8xbf16>, vector<8x8x8xf32> -> vector<8x8x8xf32>
    "tpu.trace_stop"() : () -> ()
    %69 = vector.extract_strided_slice %68 {offsets = [0, 0, 0], sizes = [2, 8, 8], strides = [1, 1, 1]} : vector<8x8x8xf32> to vector<2x8x8xf32>
    %70 = vector.extract_strided_slice %68 {offsets = [2, 0, 0], sizes = [2, 8, 8], strides = [1, 1, 1]} : vector<8x8x8xf32> to vector<2x8x8xf32>
    %71 = vector.extract_strided_slice %68 {offsets = [4, 0, 0], sizes = [2, 8, 8], strides = [1, 1, 1]} : vector<8x8x8xf32> to vector<2x8x8xf32>
    %72 = vector.extract_strided_slice %68 {offsets = [6, 0, 0], sizes = [2, 8, 8], strides = [1, 1, 1]} : vector<8x8x8xf32> to vector<2x8x8xf32>
    %73 = tpu.concatenate %69, %70, %71, %72 in 2 : vector<2x8x8xf32>, vector<2x8x8xf32>, vector<2x8x8xf32>, vector<2x8x8xf32> -> vector<2x8x32xf32>
    %74 = vector.shape_cast %73 : vector<2x8x32xf32> to vector<16x32xf32>
    %75 = arith.truncf %74 : vector<16x32xf32> to vector<16x32xbf16>
    %c0_32 = arith.constant 0 : index
    %c0_33 = arith.constant 0 : index
    %76 = vector.load %arg6[%c0_32, %c0_33] : memref<32x32xbf16, #tpu.memory_space<vmem>>, vector<32x32xbf16>
    %cst_34 = arith.constant dense<0.000000e+00> : vector<16x32xf32>
    %77 = tpu.matmul %75, %76, %cst_34 {dimension_numbers = #tpu.dot_dimension_numbers<[1], [0], [0], [1], [0, 0, 1, 1], [], []>} : vector<16x32xbf16>, vector<32x32xbf16>, vector<16x32xf32> -> vector<16x32xf32>
    %c0_35 = arith.constant 0 : index
    %c0_36 = arith.constant 0 : index
    %78 = vector.load %arg7[%c0_35, %c0_36] : memref<1x32xf32, #tpu.memory_space<vmem>>, vector<1x32xf32>
    %79 = vector.broadcast %78 : vector<1x32xf32> to vector<16x32xf32>
    %80 = arith.addf %77, %79 : vector<16x32xf32>
    %c0_37 = arith.constant 0 : index
    %c0_38 = arith.constant 0 : index
    %81 = vector.load %arg8[%c0_37, %c0_38] : memref<16x32xf32, #tpu.memory_space<vmem>>, vector<16x32xf32>
    tpu.vector_store %arg8[%c0_37, %c0_38], %80 {strides = array<i32>} : memref<16x32xf32, #tpu.memory_space<vmem>>, vector<16x32xf32>,
    return
  }
}

</mosaic_0001>

<bundles_post_ra>
// kernel: multi_head_attention.1
= control target key start
LH: loop header
LB: loop body
LE: loop exit
PB: predicated region body
PF: predicated region fallthrough
CT: control target
= control target key end

     0   :  { %13 = vsyncpa [#allocation3], 0  ;;  %s2183_s0 = inlined_call_operand.hbm [shape: f32[16,32], index: 0, kind: input, shape index: {}]   ;;  %s2184_s1 = inlined_call_operand.hbm [shape: f32[16,32], index: 1, kind: input, shape index: {}]   ;;  %s2185_s2 = inlined_call_operand.vmem [shape: f32[16,32], index: 2, kind: input, shape index: {}]   ;;  %s2186_s3 = inlined_call_operand.hbm [shape: f32[2,8,8], index: 3, kind: input, shape index: {}]   ;;  %s2187_s4 = inlined_call_operand.hbm [shape: bf16[3,32,32], index: 4, kind: input, shape index: {}]   ;;  %s2188_s5 = inlined_call_operand.hbm [shape: f32[3,1,32], index: 5, kind: input, shape index: {}]   ;;  %s2189_s6 = inlined_call_operand.vmem [shape: bf16[32,32], index: 6, kind: input, shape index: {}]   ;;  %s2190_s7 = inlined_call_operand.vmem [shape: f32[1,32], index: 7, kind: input, shape index: {}]   ;;  %s2191_s8 = inlined_call_operand.hbm [shape: f32[16,32], index: 8, kind: output, shape index: {}]  }
   0x1   :  { %14 = vsyncpa [#allocation6], 0 }
   0x2   :  { %15 = vsyncpa [#allocation9], 0 }
   0x3   :  { %16 = vsyncpa [#allocation4], 0  ;;  %s1827_s27 = smov [#allocation5]   ;;  %s1828_s29 = smov [#allocation8]  }
   0x4   :  { %s34_s28 = sshll.u32 %s1827_s27, 4  ;;  %s60_s30 = sshll.u32 %s1828_s29, 4  ;;  %s35_s28 = int_to_ptr.vmem [resolvable:$true] %s34_s28  ;;  %s1890_s30 = int_to_ptr.vmem [resolvable:$true] %s60_s30 }
   0x5   :  { %s1687_s11 = scalar_lea.hbm %s2184_s1, 256 }
   0x6   :  { %p1688_p0 = scmp.ne.s32.totalorder %s2184_s1, %s1687_s11  ;;  %p1691_p1 = scmp.lt.u32.totalorder %s1687_s11, %s2184_s1 }
   0x8   :  { %p1693_p2 = pnand %p1691_p1, %p1688_p0 }
   0xa   :  { %1696 = shalt.err (!%p1693_p2)
}
   0xb   :  { %s1697_s16 = scalar_lea.vmem %s35_s28, 256  ;;  %p1702_p4 = scmp.lt.s32.totalorder %s35_s28, %s35_s28 }
   0xc   :  { %p1698_p3 = scmp.ne.s32.totalorder %s35_s28, %s1697_s16  ;;  %p1703_p5 = scmp.lt.s32.totalorder %s1697_s16, %s1697_s16 }
   0xe   :  { %p1704_p6 = por %p1703_p5, %p1702_p4 }
  0x10   :  { %p1705_p7 = pnand %p1704_p6, %p1698_p3 }
  0x12   :  { %1708 = shalt.err (!%p1705_p7)
}
  0x13   :  { %s1829_s17 = smov 128   ;;  %s1830_s18 = smov 8  }
  0x14   :  { %40 = dma.hbm_to_vmem [thread:$0]  %s2184_s1, 256, %s35_s28, [#allocation6], %s1829_s17, %s1829_s17, %s1830_s18  }
  0x15   :  { %s1709_s23 = scalar_lea.hbm %s2187_s4, 768 }
  0x16   :  { %p1710_p8 = scmp.ne.s32.totalorder %s2187_s4, %s1709_s23  ;;  %p1713_p9 = scmp.lt.u32.totalorder %s1709_s23, %s2187_s4 }
  0x18   :  { %p1715_p10 = pnand %p1713_p9, %p1710_p8 }
  0x1a   :  { %1718 = shalt.err (!%p1715_p10)
}
  0x1b   :  { %s1719_s29 = scalar_lea.vmem %s1890_s30, 768  ;;  %p1724_p12 = scmp.lt.s32.totalorder %s1890_s30, %s1890_s30 }
  0x1c   :  { %p1720_p11 = scmp.ne.s32.totalorder %s1890_s30, %s1719_s29  ;;  %p1725_p13 = scmp.lt.s32.totalorder %s1719_s29, %s1719_s29 }
  0x1e   :  { %p1726_p0 = por %p1725_p13, %p1724_p12 }
  0x20   :  { %p1727_p1 = pnand %p1726_p0, %p1720_p11 }
  0x22   :  { %1730 = shalt.err (!%p1727_p1)
}
  0x23   :  { %s1831_s1 = smov 64   ;;  %s1832_s28 = smov 4  }
  0x24   :  { %66 = dma.hbm_to_vmem [thread:$0]  %s2187_s4, 768, %s1890_s30, [#allocation9], %s1831_s1, %s1831_s1, %s1832_s28  }
  0x25   :  { %s1833_s11 = smov [#allocation2]   ;;  %s1834_s13 = smov [#allocation7]  }
  0x26   :  { %s22_s12 = sshll.u32 %s1833_s11, 4  ;;  %s48_s14 = sshll.u32 %s1834_s13, 4  ;;  %s23_s12 = int_to_ptr.vmem [resolvable:$true] %s22_s12  ;;  %s1924_s14 = int_to_ptr.vmem [resolvable:$true] %s48_s14 }
  0x27   :  { %s1731_s19 = scalar_lea.hbm %s2183_s0, 256 }
  0x28   :  { %p1732_p2 = scmp.ne.s32.totalorder %s2183_s0, %s1731_s19  ;;  %p1735_p3 = scmp.lt.u32.totalorder %s1731_s19, %s2183_s0 }
  0x2a   :  { %p1737_p4 = pnand %p1735_p3, %p1732_p2 }
  0x2c   :  { %1740 = shalt.err (!%p1737_p4)
}
  0x2d   :  { %s1741_s4 = scalar_lea.vmem %s23_s12, 256  ;;  %p1746_p6 = scmp.lt.s32.totalorder %s23_s12, %s23_s12 }
  0x2e   :  { %p1742_p5 = scmp.ne.s32.totalorder %s23_s12, %s1741_s4  ;;  %p1747_p7 = scmp.lt.s32.totalorder %s1741_s4, %s1741_s4 }
  0x30   :  { %p1748_p8 = por %p1747_p7, %p1746_p6 }
  0x32   :  { %p1749_p9 = pnand %p1748_p8, %p1742_p5 }
  0x34   :  { %1752 = shalt.err (!%p1749_p9)
}
  0x35   :  { %28 = dma.hbm_to_vmem [thread:$0]  %s2183_s0, 256, %s23_s12, [#allocation3], %s1829_s17, %s1829_s17, %s1830_s18  }
  0x36   :  { %s1753_s27 = scalar_lea.hbm %s2186_s3, 256 }
  0x37   :  { %p1754_p10 = scmp.ne.s32.totalorder %s2186_s3, %s1753_s27  ;;  %p1757_p11 = scmp.lt.u32.totalorder %s1753_s27, %s2186_s3 }
  0x39   :  { %p1759_p12 = pnand %p1757_p11, %p1754_p10 }
  0x3b   :  { %1762 = shalt.err (!%p1759_p12)
}
  0x3c   :  { %s1763_s10 = scalar_lea.vmem %s1924_s14, 256  ;;  %p1768_p0 = scmp.lt.s32.totalorder %s1924_s14, %s1924_s14 }
  0x3d   :  { %p1764_p13 = scmp.ne.s32.totalorder %s1924_s14, %s1763_s10  ;;  %p1769_p1 = scmp.lt.s32.totalorder %s1763_s10, %s1763_s10 }
  0x3f   :  { %p1770_p2 = por %p1769_p1, %p1768_p0 }
  0x41   :  { %p1771_p3 = pnand %p1770_p2, %p1764_p13 }
  0x43   :  { %1774 = shalt.err (!%p1771_p3)
}
  0x44   :  { %54 = dma.hbm_to_vmem [thread:$0]  %s2186_s3, 256, %s1924_s14, [#allocation6], %s1829_s17, %s1829_s17, %s1830_s18  }
  0x45   :  { %s1835_s12 = smov [#allocation10]   ;;  %s1775_s19 = scalar_lea.hbm %s2188_s5, 48 }
  0x46   :  { %s72_s13 = sshll.u32 %s1835_s12, 4  ;;  %p1776_p4 = scmp.ne.s32.totalorder %s2188_s5, %s1775_s19  ;;  %s73_s13 = int_to_ptr.vmem [resolvable:$true] %s72_s13 }
  0x47   :  { %p1779_p5 = scmp.lt.u32.totalorder %s1775_s19, %s2188_s5 }
  0x49   :  { %p1781_p6 = pnand %p1779_p5, %p1776_p4 }
  0x4b   :  { %1784 = shalt.err (!%p1781_p6)
}
  0x4c   :  { %s1785_s4 = scalar_lea.vmem %s73_s13, 48  ;;  %s1789_s3 = scalar_lea.vmem %s73_s13, 64 }
  0x4d   :  { %p1786_p7 = scmp.ne.s32.totalorder %s73_s13, %s1785_s4  ;;  %p1790_p8 = scmp.lt.s32.totalorder %s73_s13, %s73_s13 }
  0x4e   :  { %p1791_p9 = scmp.lt.s32.totalorder %s1789_s3, %s1785_s4 }
  0x50   :  { %p1792_p10 = por %p1791_p9, %p1790_p8 }
  0x52   :  { %p1793_p11 = pnand %p1792_p10, %p1786_p7 }
  0x54   :  { %1796 = shalt.err (!%p1793_p11)
}
  0x55   :  { %s1836_s14 = smov 16   ;;  %s1837_s30 = smov 1  }
  0x56   :  { %78 = dma.hbm_to_vmem [thread:$0]  %s2188_s5, 48, %s73_s13, [#allocation9], %s1836_s14, %s1836_s14, %s1837_s30  }
  0x57   :  { %1819 = dma.done.wait [#allocation3], 256  }
  0x58   :  { %1820 = vsyncadd [#allocation3], 4294967040 }
  0x59   :  { %1821 = dma.done.wait [#allocation6], 512  }
  0x5a   :  { %1822 = vsyncadd [#allocation6], 4294966784 }
  0x5b   :  { %1823 = dma.done.wait [#allocation9], 816  }
  0x5c   :  { %1824 = vsyncadd [#allocation9], 4294966480  ;;  %v1838_v0 = vmov 0.0   ;;  %vm1839_vm0 = vmmov 0   ;;  %v1647_v1 = vld [vmem:[#allocation8 + $0x10] sm:$0xff]   ;;  %v1648_v2 = vld [vmem:[#allocation8] sm:$0xff]  }
  0x5d   :  { %1449 = vmatprep.subr.bf16.mxu1 %v1838_v0  ;;  %1441 = vmatprep.subr.bf16.mxu0 %v1838_v0  ;;  %v1649_v3 = vld [vmem:[#allocation8 + $0x18] sm:$0xff]   ;;  %v170_v4 = vld [vmem:[#allocation5] sm:$0xff]  ;;  %v171_v5 = vld [vmem:[#allocation5 + $0x8] sm:$0xff]  ;;  %vm125_vm1 = vcmask 261120   ;;  %vm398_vm2 = vcmask 64512   ;;  %s1841_s1 = smov 120  }
  0x5e   :  { %1453 = vmatprep.mubr.msk.bf16.mxu1 %vm1839_vm0, %v1838_v0  ;;  %1445 = vmatprep.mubr.msk.bf16.mxu0 %vm1839_vm0, %v1838_v0  ;;  %v1650_v6 = vld [vmem:[#allocation8 + $0x8] sm:$0xff]   ;;  %v99_v7 = vld [vmem:[#allocation2] sm:$0xff]  ;;  %v172_v8 = vpack.c.bf16 %v171_v5, %v170_v4  ;;  %v100_v9 = vld [vmem:[#allocation2 + $0x8] sm:$0xff]  ;;  %s1842_s28 = smov 104   ;;  %vm878_vm3 = vcmask 1043456   ;;  %vm1270_vm6 = vcmask 130048  }
  0x5f   :  { %1450 = vmatpush3.bf16.msra.mxu1 %v1647_v1  ;;  %1442 = vmatpush3.bf16.msra.mxu0 %v1648_v2  ;;  %v101_v10 = vpack.c.bf16 %v100_v9, %v99_v7  ;;  %v1651_v11 = vld [vmem:[#allocation8 + $0x20] sm:$0xff]   ;;  %v1652_v12 = vld [vmem:[#allocation8 + $0x28] sm:$0xff]   ;;  %v242_v13 = vld [vmem:[%s2185_s2] sm:$0xff]  ;;  %vm1273_vm7 = vcmask 195584   ;;  %s1844_s15 = smov [#allocation11]  }
  0x60   :  { %1451 = vmatprep.subr.bf16.mxu1 %v1838_v0  ;;  %1443 = vmatprep.subr.bf16.mxu0 %v1838_v0  ;;  %v243_v14 = vld [vmem:[%s2185_s2 + $0x8] sm:$0xff]  ;;  %v1369_v16 = vld [vmem:[#allocation10 + $0x1] ss:$0 sm:$0xff]  ;;  %v1365_v17 = vld [vmem:[#allocation10] ss:$0 sm:$0xff]  ;;  %s1840_s2 = smov 112  }
  0x61   :  { %v244_v15 = vpack.c.bf16 %v243_v14, %v242_v13  ;;  %v1373_v4 = vld [vmem:[#allocation10 + $0x2] ss:$0 sm:$0xff]  ;;  %s1351_s16 = sshll.u32 %s1844_s15, 4  ;;  %s1352_s16 = int_to_ptr.vmem [resolvable:$true] %s1351_s16 }
  0x62   :  { %s1797_s19 = scalar_lea.vmem %s1352_s16, 256  ;;  %p1802_p13 = scmp.lt.s32.totalorder %s1352_s16, %s1352_s16 }
  0x63   :  { %1452 = vmatpush3.bf16.msra.mxu1 %v1649_v3  ;;  %1444 = vmatpush3.bf16.msra.mxu0 %v1650_v6  ;;  %p1798_p12 = scmp.ne.s32.totalorder %s1352_s16, %s1797_s19  ;;  %p1803_p0 = scmp.lt.s32.totalorder %s1797_s19, %s1797_s19 }
  0x64   :  { %1465 = vmatprep.subr.bf16.mxu1 %v1838_v0  ;;  %1457 = vmatprep.subr.bf16.mxu0 %v1838_v0 }
  0x65   :  { %p1804_p1 = por %p1803_p0, %p1802_p13 }
  0x66   :  { %1454 = vmatmul.mubr.msk.bf16.vlgmr.msra.gmra.mrb[0].mxu1 %vm125_vm1, %v172_v8  ;;  %1446 = vmatmul.mubr.msk.bf16.vlgmr.msra.gmra.mrb[0].mxu0 %vm125_vm1, %v101_v10 }
  0x67   :  { %1467 = vmatprep.mubr.msk.bf16.mxu1 %vm1839_vm0, %v1838_v0  ;;  %1458 = vmatpush3.bf16.msra.mxu0 %v1651_v11  ;;  %p1805_p2 = pnand %p1804_p1, %p1798_p12 }
  0x68   :  { %1461 = vmatprep.mubr.msk.bf16.mxu0 %vm1839_vm0, %v1838_v0  ;;  %1459 = vmatprep.subr.bf16.mxu0 %v1838_v0 }
  0x6b   :  { %1460 = vmatpush3.bf16.msra.mxu0 %v1652_v12 }
  0x6c   :  { %1471 = vmatprep.subr.bf16.mxu0 %v1838_v0 }
  0x6e   :  { %1462 = vmatmul.mubr.msk.bf16.vlgmr.msra.gmra.mrb[4].mxu0 %vm125_vm1, %v244_v15 }
  0x6f   :  { %1473 = vmatprep.mubr.msk.bf16.mxu0 %vm1839_vm0, %v1838_v0 }
 0x139   :  { %v235_v18 = vpop.f32.mrb[0].mxu1  ;;  %v163_v21 = vpop.f32.mrb[0].mxu0 }
 0x13a   :  { %v236_v19 = vadd.f32 %v1369_v16, %v235_v18  ;;  %v1455_v20 = vpop.f32.mrb[1].mxu1  ;;  %v164_v23 = vadd.f32 %v1365_v17, %v163_v21  ;;  %v1447_v24 = vpop.f32.mrb[1].mxu0 }
 0x13b   :  { %v238_v22 = vpop.f32.mrb[2].mxu1  ;;  %v166_v27 = vpop.f32.mrb[2].mxu0 }
 0x13c   :  { %v239_v25 = vadd.f32 %v1369_v16, %v238_v22  ;;  %v1456_v26 = vpop.f32.mrb[3].mxu1  ;;  %v362_v28 = vpack.c.bf16 %v236_v19, %v236_v19  ;;  %v167_v29 = vadd.f32 %v1365_v17, %v166_v27  ;;  %v1448_v30 = vpop.f32.mrb[3].mxu0  ;;  %v334_v36 = vpack.c.bf16 %v164_v23, %v164_v23  ;;  %v767_v22 = vld [vmem:[#allocation7] sm:$0xff] }
 0x13d   :  { %vm769_vm4 = vcmp.eq.f32.partialorder %v767_v22, 0.0 }
 0x13e   :  { %v403_v31 = vsel %vm398_vm2, %v362_v28, 0  ;;  %v1597_v32 = vpack.i.bf16 %v239_v25, %v236_v19  ;;  %v363_v33 = vpack.c.bf16 %v239_v25, %v239_v25  ;;  %v1602_v34 = vpack.i.bf16 %v167_v29, %v164_v23  ;;  %v768_v23 = vld [vmem:[#allocation7 + $0x8] sm:$0xff] }
 0x13f   :  { %1466 = vmatpush3.bf16.xpose.msra.mxu1 %v403_v31  ;;  %v335_v37 = vpack.c.bf16 %v167_v29, %v167_v29  ;;  %vm770_vm5 = vcmp.eq.f32.partialorder %v768_v23, 0.0 }
 0x140   :  { %1598 = vrot.lane.b32.xlu1 %v1597_v32, %s1840_s2  ;;  %1588 = vrot.lane.b32.xlu0 %v1597_v32, %s1841_s1  ;;  %v449_v35 = vsel %vm398_vm2, %v363_v33, 0 }
 0x141   :  { %1472 = vmatpush3.bf16.xpose.msra.mxu0 %v449_v35  ;;  %1477 = vmatprep.subr.bf16.mxu1 %v1838_v0  ;;  %v307_v38 = vpop.f32.mrb[4].mxu0 }
 0x142   :  { %1483 = vmatprep.subr.bf16.mxu0 %v1838_v0  ;;  %v1463_v39 = vpop.f32.mrb[5].mxu0  ;;  %v2032_v8 = vadd.f32 %v1373_v4, %v307_v38 }
 0x143   :  { %v310_v40 = vpop.f32.mrb[6].mxu0 }
 0x144   :  { %1603 = vrot.lane.b32.xlu1 %v1602_v34, %s1840_s2  ;;  %1593 = vrot.lane.b32.xlu0 %v1602_v34, %s1841_s1  ;;  %v1464_v41 = vpop.f32.mrb[7].mxu0  ;;  %v2034_v11 = vadd.f32 %v1373_v4, %v310_v40  ;;  %v390_v15 = vpack.c.bf16 %v2032_v8, %v2032_v8 }
 0x146   :  { %1468 = vmatmul.mubr.msk.bf16.vlgmr.msra.gmra.mrb[4].mxu1 %vm398_vm2, %v334_v36  ;;  %v391_v17 = vpack.c.bf16 %v2034_v11, %v2034_v11  ;;  %v880_v19 = vsel %vm878_vm3, %v390_v15, 0 }
 0x147   :  { %1479 = vmatprep.mubr.msk.bf16.mxu1 %vm1839_vm0, %v1838_v0 }
 0x148   :  { %1613 = vrot.lane.b32.xlu1 %v1602_v34, %s1842_s28  ;;  %1608 = vrot.lane.b32.xlu0 %v1597_v32, %s1842_s28  ;;  %v926_v21 = vsel %vm878_vm3, %v391_v17, 0 }
 0x149   :  { %1474 = vmatmul.mubr.msk.bf16.vlgmr.msra.gmra.mrb[8].mxu0 %vm398_vm2, %v335_v37 }
 0x14a   :  { %1485 = vmatprep.mubr.msk.bf16.mxu0 %vm1839_vm0, %v1838_v0 }
 0x1b2   :  { %v1589_v42 = vpop.permute.xlu0 %1588  ;;  %v1599_v45 = vpop.permute.xlu1 %1598 }
 0x1b3   :  { %v1591_v43 = vunpack.i.h.bf16 %v1589_v42  ;;  %v1590_v44 = vunpack.i.l.bf16 %v1589_v42  ;;  %v1600_v49 = vunpack.i.l.bf16 %v1599_v45  ;;  %v1601_v52 = vunpack.i.h.bf16 %v1599_v45 }
 0x1b5   :  { %v365_v46 = vpack.c.bf16 %v1591_v43, %v1591_v43  ;;  %v364_v47 = vpack.c.bf16 %v1590_v44, %v1590_v44  ;;  %v366_v55 = vpack.c.bf16 %v1600_v49, %v1600_v49  ;;  %v367_v56 = vpack.c.bf16 %v1601_v52, %v1601_v52 }
 0x1b6   :  { %v1594_v48 = vpop.permute.xlu0 %1593  ;;  %v1604_v62 = vpop.permute.xlu1 %1603 }
 0x1b7   :  { %v495_v50 = vsel %vm398_vm2, %v364_v47, 0  ;;  %v541_v51 = vsel %vm398_vm2, %v365_v46, 0  ;;  %v1595_v53 = vunpack.i.l.bf16 %v1594_v48  ;;  %v1596_v54 = vunpack.i.h.bf16 %v1594_v48 }
 0x1b8   :  { %1478 = vmatpush3.bf16.xpose.msra.mxu1 %v495_v50  ;;  %1484 = vmatpush3.bf16.xpose.msra.mxu0 %v541_v51  ;;  %v587_v61 = vsel %vm398_vm2, %v366_v55, 0  ;;  %v633_v1 = vsel %vm398_vm2, %v367_v56, 0  ;;  %v1605_v2 = vunpack.i.l.bf16 %v1604_v62  ;;  %v1606_v3 = vunpack.i.h.bf16 %v1604_v62 }
 0x1b9   :  { %1489 = vmatprep.subr.bf16.mxu1 %v1838_v0  ;;  %1495 = vmatprep.subr.bf16.mxu0 %v1838_v0  ;;  %v336_v58 = vpack.c.bf16 %v1595_v53, %v1595_v53  ;;  %v337_v59 = vpack.c.bf16 %v1596_v54, %v1596_v54 }
 0x1ba   :  { %v1609_v57 = vpop.permute.xlu0 %1608  ;;  %v338_v7 = vpack.c.bf16 %v1605_v2, %v1605_v2  ;;  %v339_v9 = vpack.c.bf16 %v1606_v3, %v1606_v3  ;;  %v1614_v10 = vpop.permute.xlu1 %1613 }
 0x1bb   :  { %v1610_v60 = vunpack.i.l.bf16 %v1609_v57  ;;  %v1611_v63 = vunpack.i.h.bf16 %v1609_v57  ;;  %v1615_v14 = vunpack.i.l.bf16 %v1614_v10  ;;  %v1616_v16 = vunpack.i.h.bf16 %v1614_v10 }
 0x1bd   :  { %v368_v5 = vpack.c.bf16 %v1610_v60, %v1610_v60  ;;  %v369_v6 = vpack.c.bf16 %v1611_v63, %v1611_v63  ;;  %v340_v18 = vpack.c.bf16 %v1615_v14, %v1615_v14  ;;  %v341_v20 = vpack.c.bf16 %v1616_v16, %v1616_v16 }
 0x1be   :  { %v2081_v14 = vpack.i.bf16 %v2034_v11, %v2032_v8 }
 0x1bf   :  { %1480 = vmatmul.mubr.msk.bf16.vlgmr.msra.gmra.mrb[8].mxu1 %vm398_vm2, %v336_v58  ;;  %1486 = vmatmul.mubr.msk.bf16.vlgmr.msra.gmra.mrb[12].mxu0 %vm398_vm2, %v337_v59  ;;  %v679_v12 = vsel %vm398_vm2, %v368_v5, 0  ;;  %v725_v13 = vsel %vm398_vm2, %v369_v6, 0 }
 0x1c0   :  { %1490 = vmatpush3.bf16.xpose.msra.mxu1 %v587_v61  ;;  %1496 = vmatpush3.bf16.xpose.msra.mxu0 %v633_v1 }
 0x1c1   :  { %1491 = vmatprep.mubr.msk.bf16.mxu1 %vm1839_vm0, %v1838_v0  ;;  %1497 = vmatprep.mubr.msk.bf16.mxu0 %vm1839_vm0, %v1838_v0 }
 0x1c2   :  { %1501 = vmatprep.subr.bf16.mxu1 %v1838_v0  ;;  %1507 = vmatprep.subr.bf16.mxu0 %v1838_v0 }
 0x1c7   :  { %1492 = vmatmul.mubr.msk.bf16.vlgmr.msra.gmra.mrb[12].mxu1 %vm398_vm2, %v338_v7  ;;  %1498 = vmatmul.mubr.msk.bf16.vlgmr.msra.gmra.mrb[16].mxu0 %vm398_vm2, %v339_v9 }
 0x1c8   :  { %1502 = vmatpush3.bf16.xpose.msra.mxu1 %v679_v12  ;;  %1508 = vmatpush3.bf16.xpose.msra.mxu0 %v725_v13 }
 0x1c9   :  { %1503 = vmatprep.mubr.msk.bf16.mxu1 %vm1839_vm0, %v1838_v0  ;;  %1509 = vmatprep.mubr.msk.bf16.mxu0 %vm1839_vm0, %v1838_v0 }
 0x1ca   :  { %1513 = vmatprep.subr.bf16.mxu1 %v1838_v0  ;;  %1519 = vmatprep.subr.bf16.mxu0 %v1838_v0 }
 0x1cf   :  { %1504 = vmatmul.mubr.msk.bf16.vlgmr.msra.gmra.mrb[16].mxu1 %vm398_vm2, %v340_v18  ;;  %1510 = vmatmul.mubr.msk.bf16.vlgmr.msra.gmra.mrb[20].mxu0 %vm398_vm2, %v341_v20 }
 0x1d0   :  { %1514 = vmatpush3.bf16.msra.mxu1 %v880_v19  ;;  %1520 = vmatpush3.bf16.msra.mxu0 %v926_v21 }
 0x1d1   :  { %1521 = vmatprep.mubr.msk.bf16.mxu0 %vm1839_vm0, %v1838_v0  ;;  %1531 = vmatprep.subr.bf16.mxu0 %v1838_v0 }
 0x1d2   :  { %1515 = vmatprep.mubr.msk.bf16.mxu1 %vm1839_vm0, %v1838_v0  ;;  %1525 = vmatprep.subr.bf16.mxu1 %v1838_v0 }
 0x219   :  { %v439_v24 = vpop.f32.mrb[4].mxu1 }
 0x21a   :  { %v2061_v25 = vsel %vm769_vm4, -1e+09, %v439_v24  ;;  %v1469_v26 = vpop.f32.mrb[5].mxu1 }
 0x21b   :  { %v442_v27 = vpop.f32.mrb[6].mxu1  ;;  %v779_v28 = vsel %vm398_vm2, %v2061_v25, -inf }
 0x21c   :  { %v485_v29 = vpop.f32.mrb[8].mxu0  ;;  %v1470_v30 = vpop.f32.mrb[7].mxu1  ;;  %780 = vmax.xlane.f32.xlu0 %v779_v28 }
 0x21d   :  { %v772_v31 = vsel %vm770_vm5, -1e+09, %v485_v29  ;;  %v1475_v32 = vpop.f32.mrb[9].mxu0 }
 0x21e   :  { %v488_v33 = vpop.f32.mrb[10].mxu0  ;;  %v782_v34 = vsel %vm398_vm2, %v772_v31, -inf }
 0x21f   :  { %783 = vmax.xlane.f32.xlu1 %v782_v34  ;;  %v1476_v35 = vpop.f32.mrb[11].mxu0 }
 0x292   :  { %v531_v36 = vpop.f32.mrb[8].mxu1  ;;  %v577_v38 = vpop.f32.mrb[12].mxu0 }
 0x293   :  { %v773_v37 = vsel %vm769_vm4, -1e+09, %v531_v36  ;;  %v1481_v39 = vpop.f32.mrb[9].mxu1  ;;  %v1487_v40 = vpop.f32.mrb[13].mxu0  ;;  %v774_v43 = vsel %vm770_vm5, -1e+09, %v577_v38 }
 0x294   :  { %v534_v41 = vpop.f32.mrb[10].mxu1  ;;  %v785_v42 = vsel %vm398_vm2, %v773_v37, -inf  ;;  %v580_v44 = vpop.f32.mrb[14].mxu0  ;;  %v788_v47 = vsel %vm398_vm2, %v774_v43, -inf }
 0x295   :  { %786 = vmax.xlane.f32.xlu0 %v785_v42  ;;  %v1482_v45 = vpop.f32.mrb[11].mxu1  ;;  %v1488_v46 = vpop.f32.mrb[15].mxu0 }
 0x299   :  { %789 = vmax.xlane.f32.xlu0 %v788_v47 }
 0x29a   :  { %v623_v48 = vpop.f32.mrb[12].mxu1  ;;  %v669_v50 = vpop.f32.mrb[16].mxu0 }
 0x29b   :  { %v775_v49 = vsel %vm769_vm4, -1e+09, %v623_v48  ;;  %v1493_v51 = vpop.f32.mrb[13].mxu1  ;;  %v776_v52 = vsel %vm770_vm5, -1e+09, %v669_v50  ;;  %v1499_v53 = vpop.f32.mrb[17].mxu0 }
 0x29c   :  { %v626_v54 = vpop.f32.mrb[14].mxu1  ;;  %v791_v55 = vsel %vm398_vm2, %v775_v49, -inf  ;;  %v672_v56 = vpop.f32.mrb[18].mxu0  ;;  %v794_v58 = vsel %vm398_vm2, %v776_v52, -inf }
 0x29d   :  { %v1494_v57 = vpop.f32.mrb[15].mxu1  ;;  %792 = vmax.xlane.f32.xlu1 %v791_v55  ;;  %795 = vmax.xlane.f32.xlu0 %v794_v58  ;;  %v1500_v59 = vpop.f32.mrb[19].mxu0 }
 0x2a2   :  { %v715_v60 = vpop.f32.mrb[16].mxu1  ;;  %v761_v62 = vpop.f32.mrb[20].mxu0 }
 0x2a3   :  { %v777_v61 = vsel %vm769_vm4, -1e+09, %v715_v60  ;;  %v1505_v63 = vpop.f32.mrb[17].mxu1  ;;  %v778_v1 = vsel %vm770_vm5, -1e+09, %v761_v62  ;;  %v1511_v2 = vpop.f32.mrb[21].mxu0 }
 0x2a4   :  { %v718_v3 = vpop.f32.mrb[18].mxu1  ;;  %v797_v4 = vsel %vm398_vm2, %v777_v61, -inf  ;;  %v764_v5 = vpop.f32.mrb[22].mxu0  ;;  %v800_v7 = vsel %vm398_vm2, %v778_v1, -inf }
 0x2a5   :  { %v1506_v6 = vpop.f32.mrb[19].mxu1  ;;  %798 = vmax.xlane.f32.xlu1 %v797_v4  ;;  %801 = vmax.xlane.f32.xlu0 %v800_v7  ;;  %v1512_v9 = vpop.f32.mrb[23].mxu0 }
 0x2a9   :  { %v781_v17 = vpop.xlane.xlu0 %780 }
 0x2aa   :  { %v803_v18 = vsub.f32 %v2061_v25, %v781_v17 }
 0x2ac   :  { %v784_v10 = vpop.xlane.xlu1 %783  ;;  %v811_v19 = vmul.f32 1.442695, %v803_v18 }
 0x2ad   :  { %v804_v12 = vsub.f32 %v772_v31, %v784_v10 }
 0x2af   :  { %v813_v13 = vmul.f32 1.442695, %v804_v12 }
 0x2b1   :  { %1655 = vpow2.f32 %v813_v13 }
 0x2b2   :  { %1657 = vpow2.f32 %v811_v19 }
 0x2b6   :  { %1618 = vrot.lane.b32.xlu1 %v2081_v14, %s1841_s1 }
 0x2bb   :  { %v1656_v15 = vpop.eup %1655 }
 0x2bc   :  { %v830_v16 = vsel %vm398_vm2, %v1656_v15, 0.0  ;;  %v2087_v20 = vpop.eup %1657 }
 0x2bd   :  { %831 = vadd.xlane.f32.xlu0 %v830_v16  ;;  %v827_v21 = vsel %vm398_vm2, %v2087_v20, 0.0 }
 0x2da   :  { %828 = vadd.xlane.f32.xlu1 %v827_v21 }
 0x322   :  { %v787_v8 = vpop.xlane.xlu0 %786 }
 0x323   :  { %v805_v11 = vsub.f32 %v773_v37, %v787_v8 }
 0x325   :  { %v815_v22 = vmul.f32 1.442695, %v805_v11 }
 0x326   :  { %v790_v23 = vpop.xlane.xlu0 %789 }
 0x327   :  { %1659 = vpow2.f32 %v815_v22  ;;  %v806_v24 = vsub.f32 %v774_v43, %v790_v23 }
 0x329   :  { %v817_v26 = vmul.f32 1.442695, %v806_v24 }
 0x32a   :  { %v793_v27 = vpop.xlane.xlu1 %792  ;;  %v796_v29 = vpop.xlane.xlu0 %795 }
 0x32b   :  { %1661 = vpow2.f32 %v817_v26  ;;  %v807_v28 = vsub.f32 %v775_v49, %v793_v27  ;;  %v808_v25 = vsub.f32 %v776_v52, %v796_v29 }
 0x32d   :  { %v819_v30 = vmul.f32 1.442695, %v807_v28  ;;  %v821_v31 = vmul.f32 1.442695, %v808_v25 }
 0x32f   :  { %1663 = vpow2.f32 %v819_v30 }
 0x330   :  { %1665 = vpow2.f32 %v821_v31 }
 0x331   :  { %v1660_v32 = vpop.eup %1659 }
 0x332   :  { %v799_v33 = vpop.xlane.xlu1 %798  ;;  %v833_v34 = vsel %vm398_vm2, %v1660_v32, 0.0  ;;  %v802_v36 = vpop.xlane.xlu0 %801 }
 0x333   :  { %v809_v35 = vsub.f32 %v777_v61, %v799_v33  ;;  %834 = vadd.xlane.f32.xlu1 %v833_v34  ;;  %v810_v37 = vsub.f32 %v778_v1, %v802_v36 }
 0x335   :  { %v1662_v38 = vpop.eup %1661  ;;  %v823_v39 = vmul.f32 1.442695, %v809_v35  ;;  %v825_v40 = vmul.f32 1.442695, %v810_v37 }
 0x336   :  { %v836_v41 = vsel %vm398_vm2, %v1662_v38, 0.0  ;;  %v1619_v51 = vpop.permute.xlu1 %1618 }
 0x337   :  { %1667 = vpow2.f32 %v823_v39  ;;  %837 = vadd.xlane.f32.xlu0 %v836_v41  ;;  %v1621_v52 = vunpack.i.h.bf16 %v1619_v51  ;;  %v1620_v59 = vunpack.i.l.bf16 %v1619_v51 }
 0x338   :  { %1669 = vpow2.f32 %v825_v40 }
 0x339   :  { %v2093_v42 = vpop.eup %1663  ;;  %v393_v54 = vpack.c.bf16 %v1621_v52, %v1621_v52  ;;  %v392_v61 = vpack.c.bf16 %v1620_v59, %v1620_v59 }
 0x33a   :  { %v2095_v43 = vpop.eup %1665  ;;  %v839_v44 = vsel %vm398_vm2, %v2093_v42, 0.0 }
 0x33b   :  { %840 = vadd.xlane.f32.xlu1 %v839_v44  ;;  %v842_v45 = vsel %vm398_vm2, %v2095_v43, 0.0  ;;  %v1018_v57 = vsel %vm878_vm3, %v393_v54, 0  ;;  %v972_v1 = vsel %vm878_vm3, %v392_v61, 0 }
 0x33c   :  { %843 = vadd.xlane.f32.xlu0 %v842_v45 }
 0x341   :  { %v2101_v46 = vpop.eup %1667 }
 0x342   :  { %v2103_v47 = vpop.eup %1669  ;;  %v845_v48 = vsel %vm398_vm2, %v2101_v46, 0.0 }
 0x343   :  { %846 = vadd.xlane.f32.xlu1 %v845_v48  ;;  %v848_v49 = vsel %vm398_vm2, %v2103_v47, 0.0 }
 0x344   :  { %849 = vadd.xlane.f32.xlu0 %v848_v49 }
 0x34a   :  { %v832_v50 = vpop.xlane.xlu0 %831 }
 0x34b   :  { %1671 = vrcp.f32 %v832_v50 }
 0x354   :  { %1628 = vrot.lane.b32.xlu1 %v2081_v14, %s1842_s28 }
 0x355   :  { %v1672_v53 = vpop.eup %1671 }
 0x356   :  { %v860_v55 = vmul.f32 %v1672_v53, %v1656_v15 }
 0x358   :  { %v868_v56 = vpack.c.bf16 %v860_v55, %v860_v55 }
 0x35a   :  { %1522 = vmatmul.mubr.msk.bf16.vlgmr.msra.gmra.mrb[24].mxu0 %vm398_vm2, %v868_v56  ;;  %1623 = vrot.lane.b32.xlu0 %v2081_v14, %s1840_s2  ;;  %v1653_v56 = vld [vmem:[%s2189_s6] sm:$0xff]  }
 0x35b   :  { %1532 = vmatpush3.bf16.msra.mxu0 %v1018_v57  ;;  %1533 = vmatprep.mubr.msk.bf16.mxu0 %vm1839_vm0, %v1838_v0 }
 0x35c   :  { %1543 = vmatprep.subr.bf16.mxu0 %v1838_v0 }
 0x367   :  { %v829_v58 = vpop.xlane.xlu1 %828 }
 0x368   :  { %1673 = vrcp.f32 %v829_v58  ;;  %v1654_v58 = vld [vmem:[%s2189_s6 + $0x8] sm:$0xff]   ;;  %s1843_s6 = smov 24  }
 0x372   :  { %v1674_v60 = vpop.eup %1673 }
 0x373   :  { %v859_v62 = vmul.f32 %v1674_v60, %v2087_v20 }
 0x375   :  { %v867_v63 = vpack.c.bf16 %v859_v62, %v859_v62 }
 0x377   :  { %1516 = vmatmul.mubr.msk.bf16.vlgmr.msra.gmra.mrb[20].mxu1 %vm398_vm2, %v867_v63 }
 0x378   :  { %1526 = vmatpush3.bf16.msra.mxu1 %v972_v1  ;;  %1527 = vmatprep.mubr.msk.bf16.mxu1 %vm1839_vm0, %v1838_v0 }
 0x379   :  { %1537 = vmatprep.subr.bf16.mxu1 %v1838_v0 }
 0x3c0   :  { %v835_v2 = vpop.xlane.xlu1 %834 }
 0x3c1   :  { %1675 = vrcp.f32 %v835_v2 }
 0x3c4   :  { %v838_v3 = vpop.xlane.xlu0 %837 }
 0x3c5   :  { %1677 = vrcp.f32 %v838_v3 }
 0x3c8   :  { %v841_v4 = vpop.xlane.xlu1 %840 }
 0x3c9   :  { %v844_v5 = vpop.xlane.xlu0 %843  ;;  %1679 = vrcp.f32 %v841_v4 }
 0x3ca   :  { %1681 = vrcp.f32 %v844_v5 }
 0x3cb   :  { %v1676_v6 = vpop.eup %1675 }
 0x3cc   :  { %v861_v7 = vmul.f32 %v1676_v6, %v1660_v32 }
 0x3ce   :  { %v869_v9 = vpack.c.bf16 %v861_v7, %v861_v7 }
 0x3cf   :  { %v1678_v10 = vpop.eup %1677 }
 0x3d0   :  { %v862_v12 = vmul.f32 %v1678_v10, %v1662_v38  ;;  %v847_v13 = vpop.xlane.xlu1 %846  ;;  %1528 = vmatmul.mubr.msk.bf16.vlgmr.msra.gmra.mrb[24].mxu1 %vm398_vm2, %v869_v9 }
 0x3d1   :  { %v850_v14 = vpop.xlane.xlu0 %849  ;;  %1539 = vmatprep.mubr.msk.bf16.mxu1 %vm1839_vm0, %v1838_v0  ;;  %1683 = vrcp.f32 %v847_v13 }
 0x3d2   :  { %v870_v15 = vpack.c.bf16 %v862_v12, %v862_v12  ;;  %1685 = vrcp.f32 %v850_v14 }
 0x3d3   :  { %v1680_v16 = vpop.eup %1679 }
 0x3d4   :  { %v1629_v17 = vpop.permute.xlu1 %1628  ;;  %1534 = vmatmul.mubr.msk.bf16.vlgmr.msra.gmra.mrb[28].mxu0 %vm398_vm2, %v870_v15  ;;  %v1682_v18 = vpop.eup %1681  ;;  %v863_v22 = vmul.f32 %v1680_v16, %v2093_v42 }
 0x3d5   :  { %v1624_v19 = vpop.permute.xlu0 %1623  ;;  %1545 = vmatprep.mubr.msk.bf16.mxu0 %vm1839_vm0, %v1838_v0  ;;  %v1631_v20 = vunpack.i.h.bf16 %v1629_v17  ;;  %v1630_v21 = vunpack.i.l.bf16 %v1629_v17  ;;  %v864_v23 = vmul.f32 %v1682_v18, %v2095_v43 }
 0x3d6   :  { %v1626_v8 = vunpack.i.h.bf16 %v1624_v19  ;;  %v1625_v11 = vunpack.i.l.bf16 %v1624_v19  ;;  %v871_v31 = vpack.c.bf16 %v863_v22, %v863_v22 }
 0x3d7   :  { %v397_v27 = vpack.c.bf16 %v1631_v20, %v1631_v20  ;;  %v396_v28 = vpack.c.bf16 %v1630_v21, %v1630_v21  ;;  %v872_v32 = vpack.c.bf16 %v864_v23, %v864_v23 }
 0x3d8   :  { %v395_v24 = vpack.c.bf16 %v1626_v8, %v1626_v8  ;;  %v394_v26 = vpack.c.bf16 %v1625_v11, %v1625_v11 }
 0x3d9   :  { %v1156_v34 = vsel %vm878_vm3, %v396_v28, 0  ;;  %v1202_v35 = vsel %vm878_vm3, %v397_v27, 0 }
 0x3da   :  { %v1064_v29 = vsel %vm878_vm3, %v394_v26, 0  ;;  %v1110_v25 = vsel %vm878_vm3, %v395_v24, 0 }
 0x3db   :  { %1538 = vmatpush3.bf16.msra.mxu1 %v1064_v29  ;;  %1544 = vmatpush3.bf16.msra.mxu0 %v1110_v25  ;;  %v1684_v30 = vpop.eup %1683  ;;  %v1393_v25 = vld [vmem:[%s2190_s7] ss:$0 sm:$0xff] }
 0x3dc   :  { %1549 = vmatprep.subr.bf16.mxu1 %v1838_v0  ;;  %1555 = vmatprep.subr.bf16.mxu0 %v1838_v0  ;;  %v1686_v33 = vpop.eup %1685  ;;  %v865_v36 = vmul.f32 %v1684_v30, %v2101_v46 }
 0x3dd   :  { %v866_v37 = vmul.f32 %v1686_v33, %v2103_v47 }
 0x3de   :  { %1540 = vmatmul.mubr.msk.bf16.vlgmr.msra.gmra.mrb[28].mxu1 %vm398_vm2, %v871_v31  ;;  %1546 = vmatmul.mubr.msk.bf16.vlgmr.msra.gmra.mrb[32].mxu0 %vm398_vm2, %v872_v32  ;;  %v873_v38 = vpack.c.bf16 %v865_v36, %v865_v36 }
 0x3df   :  { %1550 = vmatpush3.bf16.msra.mxu1 %v1156_v34  ;;  %1556 = vmatpush3.bf16.msra.mxu0 %v1202_v35  ;;  %v874_v39 = vpack.c.bf16 %v866_v37, %v866_v37 }
 0x3e0   :  { %1551 = vmatprep.mubr.msk.bf16.mxu1 %vm1839_vm0, %v1838_v0  ;;  %1557 = vmatprep.mubr.msk.bf16.mxu0 %vm1839_vm0, %v1838_v0 }
 0x3e1   :  { %1561 = vmatprep.subr.bf16.mxu1 %v1838_v0 }
 0x3e6   :  { %1552 = vmatmul.mubr.msk.bf16.vlgmr.msra.gmra.mrb[32].mxu1 %vm398_vm2, %v873_v38  ;;  %1558 = vmatmul.mubr.msk.bf16.vlgmr.msra.gmra.mrb[36].mxu0 %vm398_vm2, %v874_v39 }
 0x3e7   :  { %1565 = vmatprep.mubr.msk.bf16.mxu1 %vm1839_vm0, %v1838_v0  ;;  %1562 = vmatpush3.bf16.msra.mxu1 %v1653_v56 }
 0x3e8   :  { %1563 = vmatprep.subr.bf16.mxu1 %v1838_v0 }
 0x3eb   :  { %1564 = vmatpush3.bf16.msra.mxu1 %v1654_v58 }
 0x42d   :  { %v962_v40 = vpop.f32.mrb[24].mxu0 }
 0x42e   :  { %v1523_v41 = vpop.f32.mrb[25].mxu0 }
 0x42f   :  { %v965_v42 = vpop.f32.mrb[26].mxu0 }
 0x430   :  { %v1524_v43 = vpop.f32.mrb[27].mxu0 }
 0x44a   :  { %v916_v44 = vpop.f32.mrb[20].mxu1 }
 0x44b   :  { %v1517_v45 = vpop.f32.mrb[21].mxu1 }
 0x44c   :  { %v919_v46 = vpop.f32.mrb[22].mxu1 }
 0x44d   :  { %v1518_v47 = vpop.f32.mrb[23].mxu1 }
 0x4a3   :  { %v1008_v48 = vpop.f32.mrb[24].mxu1 }
 0x4a4   :  { %v1529_v49 = vpop.f32.mrb[25].mxu1 }
 0x4a5   :  { %v1011_v50 = vpop.f32.mrb[26].mxu1 }
 0x4a6   :  { %v1530_v51 = vpop.f32.mrb[27].mxu1 }
 0x4a7   :  { %v1054_v52 = vpop.f32.mrb[28].mxu0 }
 0x4a8   :  { %v1632_v53 = vpack.i.bf16 %v1054_v52, %v1008_v48  ;;  %v1535_v54 = vpop.f32.mrb[29].mxu0 }
 0x4a9   :  { %v1057_v55 = vpop.f32.mrb[30].mxu0 }
 0x4aa   :  { %1633 = vrot.lane.b32.xlu1 %v1632_v53, %s1830_s18  ;;  %v1536_v57 = vpop.f32.mrb[31].mxu0 }
 0x4b1   :  { %v1100_v59 = vpop.f32.mrb[28].mxu1  ;;  %v1146_v60 = vpop.f32.mrb[32].mxu0 }
 0x4b2   :  { %v1637_v61 = vpack.i.bf16 %v1146_v60, %v1100_v59  ;;  %v1541_v62 = vpop.f32.mrb[29].mxu1  ;;  %v1547_v63 = vpop.f32.mrb[33].mxu0 }
 0x4b3   :  { %v1103_v1 = vpop.f32.mrb[30].mxu1  ;;  %v1149_v2 = vpop.f32.mrb[34].mxu0 }
 0x4b4   :  { %v1542_v3 = vpop.f32.mrb[31].mxu1  ;;  %1638 = vrot.lane.b32.xlu0 %v1637_v61, %s1836_s14  ;;  %v1548_v4 = vpop.f32.mrb[35].mxu0 }
 0x4b9   :  { %v1192_v5 = vpop.f32.mrb[32].mxu1  ;;  %v1238_v6 = vpop.f32.mrb[36].mxu0 }
 0x4ba   :  { %v1642_v7 = vpack.i.bf16 %v1238_v6, %v1192_v5  ;;  %v1553_v0 = vpop.f32.mrb[33].mxu1  ;;  %v1559_v9 = vpop.f32.mrb[37].mxu0 }
 0x4bb   :  { %v1195_v10 = vpop.f32.mrb[34].mxu1  ;;  %v1241_v12 = vpop.f32.mrb[38].mxu0 }
 0x4bc   :  { %v1554_v13 = vpop.f32.mrb[35].mxu1  ;;  %1643 = vrot.lane.b32.xlu1 %v1642_v7, %s1843_s6  ;;  %v1560_v14 = vpop.f32.mrb[39].mxu0 }
 0x51c   :  { %v1634_v15 = vpop.permute.xlu1 %1633 }
 0x51d   :  { %v1636_v17 = vunpack.i.h.bf16 %v1634_v15  ;;  %v1635_v18 = vunpack.i.l.bf16 %v1634_v15 }
 0x51f   :  { %v1269_v8 = vsel %vm398_vm2, %v962_v40, %v1636_v17  ;;  %v1268_v11 = vsel %vm398_vm2, %v916_v44, %v1635_v18 }
 0x526   :  { %v1639_v16 = vpop.permute.xlu0 %1638 }
 0x527   :  { %v1641_v19 = vunpack.i.h.bf16 %v1639_v16  ;;  %v1640_v20 = vunpack.i.l.bf16 %v1639_v16 }
 0x529   :  { %v1272_v24 = vsel %vm1270_vm6, %v1269_v8, %v1641_v19  ;;  %v1271_v26 = vsel %vm1270_vm6, %v1268_v11, %v1640_v20 }
 0x52e   :  { %v1644_v21 = vpop.permute.xlu1 %1643 }
 0x52f   :  { %v1646_v22 = vunpack.i.h.bf16 %v1644_v21  ;;  %v1645_v23 = vunpack.i.l.bf16 %v1644_v21 }
 0x531   :  { %v1275_v27 = vsel %vm1273_vm7, %v1272_v24, %v1646_v22  ;;  %v1274_v28 = vsel %vm1273_vm7, %v1271_v26, %v1645_v23 }
 0x532   :  { %v1276_v29 = vpack.c.bf16 %v1275_v27, %v1274_v28 }
 0x534   :  { %1566 = vmatmul.mubr.msk.bf16.vlgmr.msra.gmra.mrb[36].mxu1 %vm125_vm1, %v1276_v29 }
 0x607   :  { %v1337_v30 = vpop.f32.mrb[36].mxu1 }
 0x608   :  { %v1338_v31 = vadd.f32 %v1393_v25, %v1337_v30  ;;  %v1567_v32 = vpop.f32.mrb[37].mxu1 }
 0x609   :  { %v1340_v33 = vpop.f32.mrb[38].mxu1 }
 0x60a   :  { %1344 = vst.msk [vmem:[#allocation11] sm:$0xff] %vm125_vm1, %v1338_v31  ;;  %v1341_v34 = vadd.f32 %v1393_v25, %v1340_v33  ;;  %v1568_v35 = vpop.f32.mrb[39].mxu1 }
 0x60c   :  { %1345 = vst.msk [vmem:[#allocation11 + $0x8] sm:$0xff] %vm125_vm1, %v1341_v34 }
 0x60d   :  { %1808 = shalt.err (!%p1805_p2)
}
 0x60e   :  { %s1809_s21 = scalar_lea.hbm %s2191_s8, 256 }
 0x60f   :  { %p1810_p3 = scmp.ne.s32.totalorder %s2191_s8, %s1809_s21  ;;  %p1813_p4 = scmp.lt.u32.totalorder %s1809_s21, %s2191_s8 }
 0x611   :  { %p1815_p5 = pnand %p1813_p4, %p1810_p3 }
 0x613   :  { %1818 = shalt.err (!%p1815_p5)
}
 0x614   :  { %1357 = dma.vmem_to_hbm [thread:$0]  %s1352_s16, 256, %s2191_s8, [#allocation4], %s1829_s17, %s1829_s17, %s1830_s18  }
 0x615   :  { %1825 = dma.done.wait [#allocation4], 256  }
 0x616   :  { %1826 = vsyncadd [#allocation4], 4294967040 }
 0x617   :  { %1361 = vsyncpa [#allocation3], 1 }
 0x618   :  { %1362 = vsyncpa [#allocation6], 1 }
 0x619   :  { %1363 = vsyncpa [#allocation9], 1 }
 0x61a   :  { %1364 = vsyncpa [#allocation4], 1 }

</bundles_post_ra>
